<compile_context>
chip_gen: v6e
topology: v6e:2x2x1
jax: 0.10.0
libtpu: 0.0.40
codegen_flags: <defaults>
</compile_context>

<pallas_src>
import functools

import jax
import jax.numpy as jnp
from jax import lax
from jax.experimental import pallas as pl
from jax.experimental.pallas import tpu as pltpu

LANE = 128
MAX_BLOCK_ROWS = 8192      # (8192, 128) f32 = 4 MiB per input per block


def _num_tensorcores():
    """Best-effort TensorCore count: 2 on v7x, 1 on v5e/v6e (and on failure)."""
    try:
        kind = jax.devices()[0].device_kind.lower()
    except Exception:
        return 1
    return 2 if "v7" in kind else 1


def _silog_partials_kernel(pred_ref, target_ref, sd_ref, sd2_ref, sn_ref, *,
                           block_rows, sub, steps_per_core, num_blocks,
                           last_rows, ragged):
    c = pl.program_id(0)      # TensorCore-parallel axis (size 1 on v5e/v6e)
    k = pl.program_id(1)      # sequential reduction axis (last, by convention)

    @pl.when(k == 0)
    def _init():
        sd_ref[...] = jnp.zeros_like(sd_ref)
        sd2_ref[...] = jnp.zeros_like(sd2_ref)
        sn_ref[...] = jnp.zeros_like(sn_ref)

    blk = c * steps_per_core + k

    # Skip all VPU/EUP work on overhang steps (clamped re-fetched blocks).
    @pl.when(blk < num_blocks)
    def _compute():
        t = target_ref[...].astype(jnp.float32)
        p = pred_ref[...].astype(jnp.float32)
        valid = t > 0.0

        if ragged:
            # Only the last block over-hangs the (rows, 128) view: mask its
            # padded rows.  Indices are < block_rows, so no int32 overflow
            # regardless of total element count.
            limit = jnp.where(blk == num_blocks - 1,
                              jnp.int32(last_rows), jnp.int32(block_rows))
            row_ids = lax.broadcasted_iota(jnp.int32, (block_rows, LANE), 0)
            valid = valid & (row_ids < limit)

        # Fused transcendental: log(t) - log(p) == log(t / p).  Invalid or
        # garbage-padded lanes may yield NaN/Inf inside the log; the select
        # discards them, so they contribute exactly 0.
        d = jnp.where(valid, jnp.log(t / p), 0.0)

        # Per-tile partial reduce to a fixed (sub, LANE) slab: pure vreg adds,
        # accumulator size independent of the streaming block size.
        groups = block_rows // sub
        part_d = d.reshape(groups, sub, LANE).sum(axis=0)
        part_d2 = (d * d).reshape(groups, sub, LANE).sum(axis=0)
        part_n = valid.astype(jnp.float32).reshape(groups, sub, LANE).sum(axis=0)

        sd_ref[...] += part_d[None]
        sd2_ref[...] += part_d2[None]
        sn_ref[...] += part_n[None]


def silog_loss(pred, target, lambd=0.5):
    assert pred.shape == target.shape
    total = pred.size
    assert total > 0

    pred_flat = pred.reshape(-1)
    target_flat = target.reshape(-1)

    # 128-aligned prefix -> kernel; (<128-element) remainder -> pure JAX.
    rows = total // LANE
    main = rows * LANE

    s1 = jnp.float32(0.0)   # sum(d)
    s2 = jnp.float32(0.0)   # sum(d^2)
    n = jnp.float32(0.0)    # valid count

    if rows > 0:
        pred2d = pred_flat[:main].reshape(rows, LANE)
        target2d = target_flat[:main].reshape(rows, LANE)

        if rows >= MAX_BLOCK_ROWS:
            block_rows = MAX_BLOCK_ROWS
        elif rows >= 8:
            block_rows = (rows // 8) * 8        # ragged tail masked in-kernel
        else:
            block_rows = rows                   # block == full dim (allowed)
        sub = 8 if block_rows % 8 == 0 else block_rows

        num_blocks = pl.cdiv(rows, block_rows)
        last_rows = rows - (num_blocks - 1) * block_rows
        ragged = last_rows != block_rows

        ncores = min(_num_tensorcores(), num_blocks)
        steps_per_core = pl.cdiv(num_blocks, ncores)

        kernel = functools.partial(
            _silog_partials_kernel, block_rows=block_rows, sub=sub,
            steps_per_core=steps_per_core, num_blocks=num_blocks,
            last_rows=last_rows, ragged=ragged)

        def in_map(c, k):
            # Clamp so over-hanging steps still fetch a legal block; the
            # kernel skips their compute entirely.
            return (jnp.minimum(c * steps_per_core + k, num_blocks - 1), 0)

        out_shape = jax.ShapeDtypeStruct((ncores, sub, LANE), jnp.float32)
        out_spec = pl.BlockSpec((1, sub, LANE), lambda c, k: (c, 0, 0))

        if ncores > 1:
            # v7x: genuinely shard the leading axis across both TensorCores
            # (plain "parallel" alone does not change codegen).
            dim_sem = (pltpu.CORE_PARALLEL, "arbitrary")
        else:
            dim_sem = ("arbitrary", "arbitrary")

        # 2 inputs x 2 buffers x block + headroom; floor at 32 MiB so v5e's
        # 16 MiB default scoped VMEM is raised, still <= v7x's 64 MiB physical.
        block_bytes = block_rows * LANE * 4
        vmem_limit = int(max(2 * 2 * block_bytes + (8 << 20), 32 << 20))

        in_bytes = main * (pred2d.dtype.itemsize + target2d.dtype.itemsize)

        sd, sd2, sn = pl.pallas_call(
            kernel,
            out_shape=(out_shape, out_shape, out_shape),
            grid_spec=pltpu.PrefetchScalarGridSpec(
                num_scalar_prefetch=0,
                grid=(ncores, steps_per_core),
                in_specs=[
                    pl.BlockSpec((block_rows, LANE), in_map),
                    pl.BlockSpec((block_rows, LANE), in_map),
                ],
                out_specs=[out_spec, out_spec, out_spec],
            ),
            compiler_params=pltpu.CompilerParams(
                dimension_semantics=dim_sem,
                vmem_limit_bytes=vmem_limit),
            cost_estimate=pl.CostEstimate(
                flops=10 * main,
                transcendentals=2 * main,
                bytes_accessed=in_bytes),
        )(pred2d, target2d)

        s1 = s1 + jnp.sum(sd)
        s2 = s2 + jnp.sum(sd2)
        n = n + jnp.sum(sn)

    if main != total:
        # <128-element tail: tiny pure-JAX partial sums (avoids a full-array
        # jnp.pad copy for misaligned inputs).
        pt = pred_flat[main:].astype(jnp.float32)
        tt = target_flat[main:].astype(jnp.float32)
        tv = tt > 0.0
        td = jnp.where(tv, jnp.log(tt / pt), 0.0)
        s1 = s1 + jnp.sum(td)
        s2 = s2 + jnp.sum(td * td)
        n = n + jnp.sum(tv)

    mean_d = s1 / n
    var = s2 / n - lambd * mean_d * mean_d
    # var >= 0 mathematically for lambd <= 1; the clamp only absorbs tiny
    # negative fp rounding (avoids a spurious NaN).  n == 0 still yields NaN,
    # matching PyTorch's mean of an empty selection.
    return jnp.sqrt(jnp.maximum(var, 0.0))


def _reference(pred, target, lambd=0.5):
    valid = target > 0
    d = jnp.where(valid, jnp.log(jnp.where(valid, target, 1.0))
                  - jnp.log(jnp.where(valid, pred, 1.0)), 0.0)
    nv = jnp.sum(valid)
    mean_d = jnp.sum(d) / nv
    mean_d2 = jnp.sum(d * d) / nv
    return jnp.sqrt(mean_d2 - lambd * mean_d * mean_d)


if __name__ == "__main__":
    key = jax.random.PRNGKey(0)
    k1, k2, k3 = jax.random.split(key, 3)
    B, C, H, W = 2, 4, 16, 16
    # Positive depth-like predictions; targets positive but with some zeros (invalid).
    pred = jax.random.uniform(k1, (B, C, H, W), jnp.float32, 0.1, 10.0)
    target = jax.random.uniform(k2, (B, C, H, W), jnp.float32, 0.1, 10.0)
    mask = jax.random.bernoulli(k3, 0.8, (B, C, H, W))
    target = jnp.where(mask, target, 0.0)  # ~20% invalid pixels

    loss = jax.block_until_ready(silog_loss(pred, target, lambd=0.5))
    ref = _reference(pred, target, lambd=0.5)
    assert jnp.allclose(loss, ref, rtol=1e-5, atol=1e-6), (loss, ref)
    print("KERNEL_OK")
</pallas_src>

<mosaic_0001>
module attributes {stable_mosaic.version = 11 : i64} {
  func.func @_silog_partials_kernel(%arg0: i32, %arg1: i32, %arg2: memref<16x128xf32, #tpu.memory_space<vmem>>, %arg3: memref<16x128xf32, #tpu.memory_space<vmem>>, %arg4: memref<1x8x128xf32, #tpu.memory_space<vmem>>, %arg5: memref<1x8x128xf32, #tpu.memory_space<vmem>>, %arg6: memref<1x8x128xf32, #tpu.memory_space<vmem>>) attributes {dimension_semantics = [#tpu.dimension_semantics<arbitrary>, #tpu.dimension_semantics<arbitrary>], iteration_bounds = array<i64: 1, 1>, scalar_prefetch = 0 : i64, scratch_operands = 0 : i64, tpu.core_type = #tpu.core_type<tc>, window_params = [{transform_indices = @transform_0, window_bounds = array<i64: 16, 128>}, {transform_indices = @transform_1, window_bounds = array<i64: 16, 128>}, {transform_indices = @transform_2, window_bounds = array<i64: 1, 8, 128>}, {transform_indices = @transform_3, window_bounds = array<i64: 1, 8, 128>}, {transform_indices = @transform_4, window_bounds = array<i64: 1, 8, 128>}]} {
    %c0_i32 = arith.constant 0 : i32
    %0 = arith.cmpi eq, %arg1, %c0_i32 : i32
    %1 = arith.extui %0 : i1 to i32
    %c0_i32_0 = arith.constant 0 : i32
    %2 = arith.cmpi ne, %1, %c0_i32_0 : i32
    scf.if %2 {
      %cst = arith.constant 0.000000e+00 : f32
      %8 = vector.broadcast %cst : f32 to vector<1x8x128xf32>
      %c0 = arith.constant 0 : index
      %c0_3 = arith.constant 0 : index
      %c0_4 = arith.constant 0 : index
      %9 = vector.load %arg4[%c0, %c0_3, %c0_4] : memref<1x8x128xf32, #tpu.memory_space<vmem>>, vector<1x8x128xf32>
      tpu.vector_store %arg4[%c0, %c0_3, %c0_4], %8 {strides = array<i32>} : memref<1x8x128xf32, #tpu.memory_space<vmem>>, vector<1x8x128xf32>,
      %cst_5 = arith.constant 0.000000e+00 : f32
      %10 = vector.broadcast %cst_5 : f32 to vector<1x8x128xf32>
      %c0_6 = arith.constant 0 : index
      %c0_7 = arith.constant 0 : index
      %c0_8 = arith.constant 0 : index
      %11 = vector.load %arg5[%c0_6, %c0_7, %c0_8] : memref<1x8x128xf32, #tpu.memory_space<vmem>>, vector<1x8x128xf32>
      tpu.vector_store %arg5[%c0_6, %c0_7, %c0_8], %10 {strides = array<i32>} : memref<1x8x128xf32, #tpu.memory_space<vmem>>, vector<1x8x128xf32>,
      %cst_9 = arith.constant 0.000000e+00 : f32
      %12 = vector.broadcast %cst_9 : f32 to vector<1x8x128xf32>
      %c0_10 = arith.constant 0 : index
      %c0_11 = arith.constant 0 : index
      %c0_12 = arith.constant 0 : index
      %13 = vector.load %arg6[%c0_10, %c0_11, %c0_12] : memref<1x8x128xf32, #tpu.memory_space<vmem>>, vector<1x8x128xf32>
      tpu.vector_store %arg6[%c0_10, %c0_11, %c0_12], %12 {strides = array<i32>} : memref<1x8x128xf32, #tpu.memory_space<vmem>>, vector<1x8x128xf32>,
    } else {
    }
    %c1_i32 = arith.constant 1 : i32
    %3 = arith.muli %arg0, %c1_i32 : i32
    %4 = arith.addi %3, %arg1 : i32
    %c1_i32_1 = arith.constant 1 : i32
    %5 = arith.cmpi slt, %4, %c1_i32_1 : i32
    %6 = arith.extui %5 : i1 to i32
    %c0_i32_2 = arith.constant 0 : i32
    %7 = arith.cmpi ne, %6, %c0_i32_2 : i32
    scf.if %7 {
      %c0 = arith.constant 0 : index
      %c0_3 = arith.constant 0 : index
      %8 = vector.load %arg3[%c0, %c0_3] : memref<16x128xf32, #tpu.memory_space<vmem>>, vector<16x128xf32>
      %c0_4 = arith.constant 0 : index
      %c0_5 = arith.constant 0 : index
      %9 = vector.load %arg2[%c0_4, %c0_5] : memref<16x128xf32, #tpu.memory_space<vmem>>, vector<16x128xf32>
      %cst = arith.constant 0.000000e+00 : f32
      %10 = vector.broadcast %cst : f32 to vector<16x128xf32>
      %11 = arith.cmpf ogt, %8, %10 : vector<16x128xf32>
      %12 = arith.divf %8, %9 : vector<16x128xf32>
      %13 = math.log %12 : vector<16x128xf32>
      %cst_6 = arith.constant 0.000000e+00 : f32
      %14 = vector.broadcast %cst_6 : f32 to vector<16x128xf32>
      %15 = arith.select %11, %13, %14 : vector<16x128xi1>, vector<16x128xf32>
      %16 = vector.shape_cast %15 : vector<16x128xf32> to vector<2x8x128xf32>
      %cst_7 = arith.constant dense<0.000000e+00> : vector<8x128xf32>
      %17 = vector.multi_reduction <add>, %16, %cst_7 [0] : vector<2x8x128xf32> to vector<8x128xf32>
      %18 = arith.mulf %15, %15 : vector<16x128xf32>
      %19 = vector.shape_cast %18 : vector<16x128xf32> to vector<2x8x128xf32>
      %cst_8 = arith.constant dense<0.000000e+00> : vector<8x128xf32>
      %20 = vector.multi_reduction <add>, %19, %cst_8 [0] : vector<2x8x128xf32> to vector<8x128xf32>
      %21 = arith.extui %11 : vector<16x128xi1> to vector<16x128xi32>
      %22 = arith.sitofp %21 : vector<16x128xi32> to vector<16x128xf32>
      %23 = vector.shape_cast %22 : vector<16x128xf32> to vector<2x8x128xf32>
      %cst_9 = arith.constant dense<0.000000e+00> : vector<8x128xf32>
      %24 = vector.multi_reduction <add>, %23, %cst_9 [0] : vector<2x8x128xf32> to vector<8x128xf32>
      %c0_10 = arith.constant 0 : index
      %c0_11 = arith.constant 0 : index
      %c0_12 = arith.constant 0 : index
      %25 = vector.load %arg4[%c0_10, %c0_11, %c0_12] : memref<1x8x128xf32, #tpu.memory_space<vmem>>, vector<1x8x128xf32>
      %26 = vector.shape_cast %17 : vector<8x128xf32> to vector<1x8x128xf32>
      %27 = arith.addf %25, %26 : vector<1x8x128xf32>
      %c0_13 = arith.constant 0 : index
      %c0_14 = arith.constant 0 : index
      %c0_15 = arith.constant 0 : index
      %28 = vector.load %arg4[%c0_13, %c0_14, %c0_15] : memref<1x8x128xf32, #tpu.memory_space<vmem>>, vector<1x8x128xf32>
      tpu.vector_store %arg4[%c0_13, %c0_14, %c0_15], %27 {strides = array<i32>} : memref<1x8x128xf32, #tpu.memory_space<vmem>>, vector<1x8x128xf32>,
      %c0_16 = arith.constant 0 : index
      %c0_17 = arith.constant 0 : index
      %c0_18 = arith.constant 0 : index
      %29 = vector.load %arg5[%c0_16, %c0_17, %c0_18] : memref<1x8x128xf32, #tpu.memory_space<vmem>>, vector<1x8x128xf32>
      %30 = vector.shape_cast %20 : vector<8x128xf32> to vector<1x8x128xf32>
      %31 = arith.addf %29, %30 : vector<1x8x128xf32>
      %c0_19 = arith.constant 0 : index
      %c0_20 = arith.constant 0 : index
      %c0_21 = arith.constant 0 : index
      %32 = vector.load %arg5[%c0_19, %c0_20, %c0_21] : memref<1x8x128xf32, #tpu.memory_space<vmem>>, vector<1x8x128xf32>
      tpu.vector_store %arg5[%c0_19, %c0_20, %c0_21], %31 {strides = array<i32>} : memref<1x8x128xf32, #tpu.memory_space<vmem>>, vector<1x8x128xf32>,
      %c0_22 = arith.constant 0 : index
      %c0_23 = arith.constant 0 : index
      %c0_24 = arith.constant 0 : index
      %33 = vector.load %arg6[%c0_22, %c0_23, %c0_24] : memref<1x8x128xf32, #tpu.memory_space<vmem>>, vector<1x8x128xf32>
      %34 = vector.shape_cast %24 : vector<8x128xf32> to vector<1x8x128xf32>
      %35 = arith.addf %33, %34 : vector<1x8x128xf32>
      %c0_25 = arith.constant 0 : index
      %c0_26 = arith.constant 0 : index
      %c0_27 = arith.constant 0 : index
      %36 = vector.load %arg6[%c0_25, %c0_26, %c0_27] : memref<1x8x128xf32, #tpu.memory_space<vmem>>, vector<1x8x128xf32>
      tpu.vector_store %arg6[%c0_25, %c0_26, %c0_27], %35 {strides = array<i32>} : memref<1x8x128xf32, #tpu.memory_space<vmem>>, vector<1x8x128xf32>,
    } else {
    }
    return
  }
  func.func @transform_0(%arg0: i32, %arg1: i32) -> (i32, i32) {
    %c1_i32 = arith.constant 1 : i32
    %0 = arith.muli %arg0, %c1_i32 : i32
    %1 = arith.addi %0, %arg1 : i32
    %c0_i32 = arith.constant 0 : i32
    %2 = arith.minsi %1, %c0_i32 : i32
    %c0_i32_0 = arith.constant 0 : i32
    %c0_i32_1 = arith.constant 0 : i32
    return %2, %c0_i32_0 : i32, i32
  }
  func.func @transform_1(%arg0: i32, %arg1: i32) -> (i32, i32) {
    %c1_i32 = arith.constant 1 : i32
    %0 = arith.muli %arg0, %c1_i32 : i32
    %1 = arith.addi %0, %arg1 : i32
    %c0_i32 = arith.constant 0 : i32
    %2 = arith.minsi %1, %c0_i32 : i32
    %c0_i32_0 = arith.constant 0 : i32
    %c0_i32_1 = arith.constant 0 : i32
    return %2, %c0_i32_0 : i32, i32
  }
  func.func @transform_2(%arg0: i32, %arg1: i32) -> (i32, i32, i32) {
    %c0_i32 = arith.constant 0 : i32
    %c0_i32_0 = arith.constant 0 : i32
    %c0_i32_1 = arith.constant 0 : i32
    return %arg0, %c0_i32, %c0_i32_0 : i32, i32, i32
  }
  func.func @transform_3(%arg0: i32, %arg1: i32) -> (i32, i32, i32) {
    %c0_i32 = arith.constant 0 : i32
    %c0_i32_0 = arith.constant 0 : i32
    %c0_i32_1 = arith.constant 0 : i32
    return %arg0, %c0_i32, %c0_i32_0 : i32, i32, i32
  }
  func.func @transform_4(%arg0: i32, %arg1: i32) -> (i32, i32, i32) {
    %c0_i32 = arith.constant 0 : i32
    %c0_i32_0 = arith.constant 0 : i32
    %c0_i32_1 = arith.constant 0 : i32
    return %arg0, %c0_i32, %c0_i32_0 : i32, i32, i32
  }
}

</mosaic_0001>

<bundles_post_ra>
// kernel: tpu_custom_call.1
= control target key start
LH: loop header
LB: loop body
LE: loop exit
PB: predicated region body
PF: predicated region fallthrough
CT: control target
= control target key end

     0   :  { %10 = vsyncpa [#allocation3], 0  ;;  %s335_s0 = inlined_call_operand.hbm [shape: f32[16,128], index: 0, kind: input, shape index: {}]   ;;  %s336_s1 = inlined_call_operand.hbm [shape: f32[16,128], index: 1, kind: input, shape index: {}]   ;;  %s337_s2 = inlined_call_operand.hbm [shape: f32[1,8,128], index: 2, kind: output, shape index: {0}]   ;;  %s338_s3 = inlined_call_operand.hbm [shape: f32[1,8,128], index: 3, kind: output, shape index: {1}]   ;;  %s339_s4 = inlined_call_operand.hbm [shape: f32[1,8,128], index: 4, kind: output, shape index: {2}]  }
   0x1   :  { %11 = vsyncpa [#allocation6], 0 }
   0x2   :  { %12 = vsyncpa [#allocation4], 0 }
   0x3   :  { %13 = vsyncpa [#allocation9], 0  ;;  %s283_s15 = smov [#allocation2]  }
   0x4   :  { %s25_s16 = sshll.u32 %s283_s15, 4  ;;  %s26_s16 = int_to_ptr.vmem [resolvable:$true] %s25_s16 }
   0x5   :  { %s183_s17 = scalar_lea.vmem %s26_s16, 256  ;;  %p188_p1 = scmp.lt.s32.totalorder %s26_s16, %s26_s16 }
   0x6   :  { %p184_p0 = scmp.ne.s32.totalorder %s26_s16, %s183_s17  ;;  %p189_p2 = scmp.lt.s32.totalorder %s183_s17, %s183_s17 }
   0x8   :  { %p190_p3 = por %p189_p2, %p188_p1 }
   0xa   :  { %p191_p4 = pnand %p190_p3, %p184_p0 }
   0xc   :  { %194 = shalt.err (!%p191_p4)
}
   0xd   :  { %s284_s18 = smov 128   ;;  %s285_s19 = smov 8  }
   0xe   :  { %31 = dma.hbm_to_vmem [thread:$0]  %s335_s0, 256, %s26_s16, [#allocation3], %s284_s18, %s284_s18, %s285_s19  }
   0xf   :  { %s286_s22 = smov [#allocation5]  }
  0x10   :  { %s43_s23 = sshll.u32 %s286_s22, 4  ;;  %s44_s23 = int_to_ptr.vmem [resolvable:$true] %s43_s23 }
  0x11   :  { %s203_s24 = scalar_lea.vmem %s44_s23, 256  ;;  %p208_p6 = scmp.lt.s32.totalorder %s44_s23, %s44_s23 }
  0x12   :  { %p204_p5 = scmp.ne.s32.totalorder %s44_s23, %s203_s24  ;;  %p209_p7 = scmp.lt.s32.totalorder %s203_s24, %s203_s24 }
  0x14   :  { %p210_p8 = por %p209_p7, %p208_p6 }
  0x16   :  { %p211_p9 = pnand %p210_p8, %p204_p5 }
  0x18   :  { %214 = shalt.err (!%p211_p9)
}
  0x19   :  { %49 = dma.hbm_to_vmem [thread:$0]  %s336_s1, 256, %s44_s23, [#allocation6], %s284_s18, %s284_s18, %s285_s19  }
  0x1a   :  { %275 = dma.done.wait [#allocation3], 256  }
  0x1b   :  { %276 = vsyncadd [#allocation3], 4294967040 }
  0x1c   :  { %277 = dma.done.wait [#allocation6], 256  }
  0x1d   :  { %278 = vsyncadd [#allocation6], 4294967040  ;;  %v76_v0 = vld [vmem:[#allocation5] sm:$0xff]  ;;  %v77_v1 = vld [vmem:[#allocation5 + $0x8] sm:$0xff]  ;;  %v287_v4 = vmov 0.0   ;;  %s288_s0 = smov [#allocation7]  }
  0x1e   :  { %v78_v2 = vld [vmem:[#allocation2] sm:$0xff]  ;;  %v79_v3 = vld [vmem:[#allocation2 + $0x8] sm:$0xff]  ;;  %vm80_vm0 = vcmp.gt.f32.partialorder %v76_v0, 0.0  ;;  %vm81_vm1 = vcmp.gt.f32.partialorder %v77_v1, 0.0  ;;  %s116_s1 = sshll.u32 %s288_s0, 4  ;;  %s289_s27 = smov [#allocation8]   ;;  %s117_s1 = int_to_ptr.vmem [resolvable:$true] %s116_s1 }
  0x1f   :  { %167 = vrcp.f32 %v78_v2  ;;  %v157_v5 = vsel %vm80_vm0, 1.0, %v287_v4  ;;  %v158_v6 = vsel %vm81_vm1, 1.0, %v287_v4  ;;  %s126_s28 = sshll.u32 %s289_s27, 4  ;;  %s290_s29 = smov [#allocation10]   ;;  %s127_s28 = int_to_ptr.vmem [resolvable:$true] %s126_s28 }
  0x20   :  { %169 = vrcp.f32 %v79_v3  ;;  %v100_v7 = vadd.f32 %v158_v6, %v157_v5  ;;  %s136_s30 = sshll.u32 %s290_s29, 4  ;;  %s215_s5 = scalar_lea.vmem %s117_s1, 128  ;;  %s137_s30 = int_to_ptr.vmem [resolvable:$true] %s136_s30 }
  0x21   :  { %p216_p10 = scmp.ne.s32.totalorder %s117_s1, %s215_s5  ;;  %p220_p11 = scmp.lt.s32.totalorder %s117_s1, %s117_s1 }
  0x22   :  { %109 = vst [vmem:[#allocation10] sm:$0xff] %v100_v7  ;;  %p221_p12 = scmp.lt.s32.totalorder %s215_s5, %s215_s5 }
  0x24   :  { %p222_p13 = por %p221_p12, %p220_p11 }
  0x26   :  { %p223_p0 = pnand %p222_p13, %p216_p10 }
  0x2c   :  { %v168_v8 = vpop.eup %167 }
  0x2d   :  { %v170_v9 = vpop.eup %169  ;;  %v83_v10 = vmul.f32 %v168_v8, %v76_v0 }
  0x2e   :  { %v85_v11 = vmul.f32 %v170_v9, %v77_v1 }
  0x2f   :  { %171 = vlog2.f32 %v83_v10 }
  0x30   :  { %173 = vlog2.f32 %v85_v11 }
  0x3c   :  { %v172_v12 = vpop.eup %171 }
  0x3d   :  { %v174_v13 = vpop.eup %173  ;;  %v87_v14 = vmul.f32 0.6931472, %v172_v12 }
  0x3e   :  { %v89_v15 = vmul.f32 0.6931472, %v174_v13 }
  0x3f   :  { %v90_v16 = vsel %vm80_vm0, %v87_v14, 0.0 }
  0x40   :  { %v91_v17 = vsel %vm81_vm1, %v89_v15, 0.0  ;;  %v93_v18 = vmul.f32 %v90_v16, %v90_v16 }
  0x41   :  { %v94_v19 = vmul.f32 %v91_v17, %v91_v17  ;;  %v92_v20 = vadd.f32 %v91_v17, %v90_v16 }
  0x43   :  { %v95_v21 = vadd.f32 %v94_v19, %v93_v18  ;;  %103 = vst [vmem:[#allocation7] sm:$0xff] %v92_v20 }
  0x44   :  { %226 = shalt.err (!%p223_p0)
}
  0x45   :  { %119 = dma.vmem_to_hbm [thread:$0]  %s117_s1, 128, %s337_s2, [#allocation4]   ;;  %106 = vst [vmem:[#allocation8] sm:$0xff] %v95_v21 }
  0x46   :  { %s235_s8 = scalar_lea.vmem %s127_s28, 128  ;;  %p240_p2 = scmp.lt.s32.totalorder %s127_s28, %s127_s28 }
  0x47   :  { %p236_p1 = scmp.ne.s32.totalorder %s127_s28, %s235_s8  ;;  %p241_p3 = scmp.lt.s32.totalorder %s235_s8, %s235_s8 }
  0x49   :  { %p242_p4 = por %p241_p3, %p240_p2 }
  0x4b   :  { %p243_p5 = pnand %p242_p4, %p236_p1 }
  0x4d   :  { %246 = shalt.err (!%p243_p5)
}
  0x4e   :  { %129 = dma.vmem_to_hbm [thread:$0]  %s127_s28, 128, %s338_s3, [#allocation9]  }
  0x4f   :  { %s255_s11 = scalar_lea.vmem %s137_s30, 128  ;;  %p260_p7 = scmp.lt.s32.totalorder %s137_s30, %s137_s30 }
  0x50   :  { %p256_p6 = scmp.ne.s32.totalorder %s137_s30, %s255_s11  ;;  %p261_p8 = scmp.lt.s32.totalorder %s255_s11, %s255_s11 }
  0x52   :  { %p262_p9 = por %p261_p8, %p260_p7 }
  0x54   :  { %p263_p10 = pnand %p262_p9, %p256_p6 }
  0x56   :  { %266 = shalt.err (!%p263_p10)
}
  0x57   :  { %139 = dma.vmem_to_hbm [thread:$0]  %s137_s30, 128, %s339_s4, [#allocation9]  }
  0x58   :  { %279 = dma.done.wait [#allocation4], 128  }
  0x59   :  { %280 = vsyncadd [#allocation4], 4294967168 }
  0x5a   :  { %281 = dma.done.wait [#allocation9], 256  }
  0x5b   :  { %282 = vsyncadd [#allocation9], 4294967040 }
  0x5c   :  { %149 = vsyncpa [#allocation3], 1 }
  0x5d   :  { %150 = vsyncpa [#allocation6], 1 }
  0x5e   :  { %151 = vsyncpa [#allocation4], 1 }
  0x5f   :  { %152 = vsyncpa [#allocation9], 1 }

</bundles_post_ra>
